<compile_context>
chip_gen: v6e
topology: v6e:2x2x1
jax: 0.10.0
libtpu: 0.0.40
codegen_flags: <defaults>
</compile_context>

<pallas_src>
import numpy as np
import jax
import jax.numpy as jnp
from jax.experimental import pallas as pl
from jax.experimental.pallas import tpu as pltpu


# ---------------------------------------------------------------------------
# Mask construction (exact replica of MADE.update_masks with numpy RandomState)
# ---------------------------------------------------------------------------
def build_masks(nin_extra, hidden_sizes, nout, natural_ordering=False, seed=0):
    L = len(hidden_sizes)
    rng = np.random.RandomState(seed)
    m = {}
    m[-2] = np.arange(nout) if natural_ordering else rng.permutation(nout)
    t = np.where(m[-2] == 0)[0][0]
    m[-2][t] = m[-2][0]
    m[-2][0] = 0
    m[-1] = np.concatenate([-1 * np.ones(nin_extra), m[-2].copy()])
    for l in range(L):
        m[l] = rng.randint(m[l - 1].min(), nout - 1, size=hidden_sizes[l])
    masks = [m[l - 1][:, None] <= m[l][None, :] for l in range(L)]
    masks.append(
        np.concatenate([m[-1].copy(), m[L - 1]])[:, None] < m[-2][None, :]
    )
    # masks[i] has shape [in_features, out_features]
    return [mk.astype(np.float32) for mk in masks]


# ---------------------------------------------------------------------------
# Pallas kernel: fused MADE forward (2 hidden layers), transposed layout.
#   activations : [features, tb]   (batch on the lane axis)
#   weights     : [out, in]        (PyTorch-native, pre-masked)
#   biases      : [out, 1]         (f32)
# ---------------------------------------------------------------------------
def made_kernel(x_ref,
                w1_ref, b1_ref,
                w2_ref, b2_ref,
                w3x_ref, w3h_ref, b3_ref,
                out_ref):
    x = x_ref[...]                                                 # [in0, tb]

    # hidden layer 1: masked linear (mask folded into w1) + ReLU (f32)
    h1 = jnp.dot(w1_ref[...], x, preferred_element_type=jnp.float32) + b1_ref[...]
    h1 = jnp.maximum(h1, 0.0)                                      # [H1, tb] f32
    h1 = h1.astype(w2_ref.dtype)                                   # bf16 feed if narrow

    # hidden layer 2
    h2 = jnp.dot(w2_ref[...], h1, preferred_element_type=jnp.float32) + b2_ref[...]
    h2 = jnp.maximum(h2, 0.0)                                      # [H2, tb] f32
    h2 = h2.astype(w3h_ref.dtype)

    # output layer on concat([x, y_1], -1)  ==  W3x @ x + W3h @ y_1  (+ bias)
    out = (jnp.dot(w3x_ref[...], x, preferred_element_type=jnp.float32)
           + jnp.dot(w3h_ref[...], h2, preferred_element_type=jnp.float32)
           + b3_ref[...])
    out_ref[...] = out.astype(out_ref.dtype)                       # [nout, tb]


def _round_up(x, m):
    return ((x + m - 1) // m) * m


def _vmem_budget_bytes(tb, in0, nout, H1, H2, params, act_itemsize):
    # True need: double-buffered streamed x/out tiles, single-buffered
    # resident params, f32 intermediates, ~2 MiB headroom.  No artificial
    # 32/48 MiB floor/cap (would starve surrounding fusions on v7x's 64 MiB).
    stream = 2 * tb * (in0 + nout) * act_itemsize
    weights = sum(int(np.prod(p.shape)) * jnp.dtype(p.dtype).itemsize
                  for p in params)
    interm = tb * (H1 + H2 + nout) * 4
    need = stream + weights + interm + (2 << 20)
    return int(min(max(need, 4 << 20), 64 << 20))


def made_forward(x, params, *, block_b=4096, act_dtype=jnp.float32):
    """x: [B, in0]; params: pre-masked weights [out, in] + biases [out, 1] (f32)."""
    w1, b1, w2, b2, w3x, w3h, b3 = params
    B, in0 = x.shape
    H1, H2, nout = w1.shape[0], w2.shape[0], w3x.shape[0]

    # Batch lives on the lane axis -> tile must be a multiple of 128.  Pick the
    # biggest tile <= block_b that still leaves >= 2 grid steps when B allows
    # it, so v7x's two TensorCores both get tiles.
    block_b = _round_up(block_b, 128)
    tb = min(block_b, max(128, _round_up(pl.cdiv(B, 2), 128)))
    Bp = _round_up(B, tb)

    xt = x.T.astype(act_dtype)                          # [in0, B] lane-dense
    if Bp != B:
        xt = jnp.pad(xt, ((0, 0), (0, Bp - B)))
    grid = (Bp // tb,)

    # Streamed activation tiles (default double buffer).
    x_spec = pl.BlockSpec((in0, tb), lambda i: (0, i))
    out_spec = pl.BlockSpec((nout, tb), lambda i: (0, i))

    # Weights/biases: VMEM-resident across all grid steps, fetched once.
    def const_spec(arr):
        return pl.BlockSpec(arr.shape, lambda i: (0, 0),
                            pipeline_mode=pl.Buffered(1))

    in_specs = [x_spec,
                const_spec(w1), const_spec(b1),
                const_spec(w2), const_spec(b2),
                const_spec(w3x), const_spec(w3h), const_spec(b3)]

    act_itemsize = jnp.dtype(act_dtype).itemsize
    flops = 2 * Bp * (in0 * H1 + H1 * H2 + (in0 + H2) * nout)
    param_bytes = sum(int(np.prod(p.shape)) * jnp.dtype(p.dtype).itemsize
                      for p in params)
    cost = pl.CostEstimate(
        flops=flops, transcendentals=0,
        bytes_accessed=param_bytes + Bp * (in0 + nout) * act_itemsize)

    out_t = pl.pallas_call(
        made_kernel,
        out_shape=jax.ShapeDtypeStruct((nout, Bp), act_dtype),
        grid_spec=pltpu.PrefetchScalarGridSpec(
            num_scalar_prefetch=0,
            grid=grid,
            in_specs=in_specs,
            out_specs=out_spec,
        ),
        compiler_params=pltpu.CompilerParams(
            dimension_semantics=("parallel",),
            vmem_limit_bytes=_vmem_budget_bytes(
                tb, in0, nout, H1, H2, params, act_itemsize),
        ),
        cost_estimate=cost,
    )(xt, w1, b1, w2, b2, w3x, w3h, b3)

    out = out_t.T                                       # [Bp, nout]
    return out[:B] if Bp != B else out


# ---------------------------------------------------------------------------
# Deterministic parameter construction (mimics nn.Linear default init bounds)
# ---------------------------------------------------------------------------
def init_linear(key, in_f, out_f):
    kw, kb = jax.random.split(key)
    bound = 1.0 / np.sqrt(in_f)
    # PyTorch-native [out, in] layout; bias [out, 1] for the transposed kernel.
    w = jax.random.uniform(kw, (out_f, in_f), jnp.float32, -bound, bound)
    b = jax.random.uniform(kb, (out_f, 1), jnp.float32, -bound, bound)
    return w, b


if __name__ == "__main__":
    # MADE configuration (small, consistent with the module)
    nin_extra = 2
    nout = 8
    hidden_sizes = [32, 32]
    batch = 256                    # 2 lane-dense tiles -> grid=(2,), both TCs busy
    in0 = nout + nin_extra         # input feature size of the network

    # masks (identical to MADE.update_masks with seed=0, natural_ordering=False)
    masks = build_masks(nin_extra, hidden_sizes, nout,
                        natural_ordering=False, seed=0)
    # masks are [in, out]; weights are stored [out, in] -> transpose the masks.
    m1 = jnp.asarray(masks[0].T)                       # [H1, in0]
    m2 = jnp.asarray(masks[1].T)                       # [H2, H1]
    m3 = jnp.asarray(masks[2].T)                       # [nout, in0 + H2]

    # weights / biases
    key = jax.random.PRNGKey(0)
    k1, k2, k3, kx = jax.random.split(key, 4)
    w1, b1 = init_linear(k1, in0, hidden_sizes[0])
    w2, b2 = init_linear(k2, hidden_sizes[0], hidden_sizes[1])
    w3, b3 = init_linear(k3, in0 + hidden_sizes[1], nout)

    # Pre-apply the (static) masks to the weights once, outside the kernel.
    w1m = m1 * w1
    w2m = m2 * w2
    w3m = m3 * w3
    w3x = w3m[:, :in0]             # columns fed by x
    w3h = w3m[:, in0:]             # columns fed by y_1

    # input x: [batch, nout + nin_extra]
    x = jax.random.normal(kx, (batch, in0), jnp.float32)

    # ---------------- f32 path: exact vs. reference --------------------------
    params_f32 = (w1m, b1, w2m, b2, w3x, w3h, b3)
    out_f32 = jax.block_until_ready(made_forward(x, params_f32))

    h1_ref = jnp.maximum(x @ w1m.T + b1.T, 0.0)
    h2_ref = jnp.maximum(h1_ref @ w2m.T + b2.T, 0.0)
    ref = jnp.concatenate([x, h2_ref], axis=-1) @ w3m.T + b3.T

    assert out_f32.shape == (batch, nout)
    assert jnp.allclose(out_f32, ref, atol=1e-5, rtol=1e-5)

    # ---------------- bf16 path: halved DMA bytes, f32 accumulation ----------
    params_bf16 = (w1m.astype(jnp.bfloat16), b1,
                   w2m.astype(jnp.bfloat16), b2,
                   w3x.astype(jnp.bfloat16), w3h.astype(jnp.bfloat16), b3)
    out_bf16 = jax.block_until_ready(
        made_forward(x, params_bf16, act_dtype=jnp.bfloat16))

    def _bf(v):  # round-trip through bf16, matching the kernel's narrow feeds
        return v.astype(jnp.bfloat16).astype(jnp.float32)

    xb = _bf(x)
    h1b = _bf(jnp.maximum(xb @ _bf(w1m).T + b1.T, 0.0))
    h2b = _bf(jnp.maximum(h1b @ _bf(w2m).T + b2.T, 0.0))
    refb = xb @ _bf(w3x).T + h2b @ _bf(w3h).T + b3.T

    assert out_bf16.shape == (batch, nout)
    assert jnp.allclose(out_bf16.astype(jnp.float32), refb, atol=2e-2, rtol=2e-2)

    print("KERNEL_OK")
</pallas_src>

<mosaic_0001>
module attributes {stable_mosaic.version = 11 : i64} {
  func.func @made_kernel(%arg0: i32, %arg1: memref<10x128xf32, #tpu.memory_space<vmem>>, %arg2: memref<32x10xf32, #tpu.memory_space<vmem>>, %arg3: memref<32x1xf32, #tpu.memory_space<vmem>>, %arg4: memref<32x32xf32, #tpu.memory_space<vmem>>, %arg5: memref<32x1xf32, #tpu.memory_space<vmem>>, %arg6: memref<8x10xf32, #tpu.memory_space<vmem>>, %arg7: memref<8x32xf32, #tpu.memory_space<vmem>>, %arg8: memref<8x1xf32, #tpu.memory_space<vmem>>, %arg9: memref<8x128xf32, #tpu.memory_space<vmem>>) attributes {dimension_semantics = [#tpu.dimension_semantics<parallel>], iteration_bounds = array<i64: 2>, scalar_prefetch = 0 : i64, scratch_operands = 0 : i64, tpu.core_type = #tpu.core_type<tc>, window_params = [{transform_indices = @transform_0, window_bounds = array<i64: 10, 128>}, {pipeline_mode = #tpu.pipeline_mode<synchronous>, transform_indices = @transform_1, window_bounds = array<i64: 32, 10>}, {pipeline_mode = #tpu.pipeline_mode<synchronous>, transform_indices = @transform_2, window_bounds = array<i64: 32, 1>}, {pipeline_mode = #tpu.pipeline_mode<synchronous>, transform_indices = @transform_3, window_bounds = array<i64: 32, 32>}, {pipeline_mode = #tpu.pipeline_mode<synchronous>, transform_indices = @transform_4, window_bounds = array<i64: 32, 1>}, {pipeline_mode = #tpu.pipeline_mode<synchronous>, transform_indices = @transform_5, window_bounds = array<i64: 8, 10>}, {pipeline_mode = #tpu.pipeline_mode<synchronous>, transform_indices = @transform_6, window_bounds = array<i64: 8, 32>}, {pipeline_mode = #tpu.pipeline_mode<synchronous>, transform_indices = @transform_7, window_bounds = array<i64: 8, 1>}, {transform_indices = @transform_8, window_bounds = array<i64: 8, 128>}]} {
    %c0 = arith.constant 0 : index
    %c0_0 = arith.constant 0 : index
    %0 = vector.load %arg1[%c0, %c0_0] : memref<10x128xf32, #tpu.memory_space<vmem>>, vector<10x128xf32>
    %c0_1 = arith.constant 0 : index
    %c0_2 = arith.constant 0 : index
    %1 = vector.load %arg2[%c0_1, %c0_2] : memref<32x10xf32, #tpu.memory_space<vmem>>, vector<32x10xf32>
    %cst = arith.constant dense<0.000000e+00> : vector<32x128xf32>
    %2 = tpu.matmul %1, %0, %cst {dimension_numbers = #tpu.dot_dimension_numbers<[1], [0], [0], [1], [0, 0, 1, 1], [], []>} : vector<32x10xf32>, vector<10x128xf32>, vector<32x128xf32> -> vector<32x128xf32>
    %c0_3 = arith.constant 0 : index
    %c0_4 = arith.constant 0 : index
    %3 = vector.load %arg3[%c0_3, %c0_4] : memref<32x1xf32, #tpu.memory_space<vmem>>, vector<32x1xf32>
    %4 = vector.broadcast %3 : vector<32x1xf32> to vector<32x128xf32>
    %5 = arith.addf %2, %4 : vector<32x128xf32>
    %cst_5 = arith.constant 0.000000e+00 : f32
    %6 = vector.broadcast %cst_5 : f32 to vector<32x128xf32>
    %7 = arith.maximumf %5, %6 : vector<32x128xf32>
    %c0_6 = arith.constant 0 : index
    %c0_7 = arith.constant 0 : index
    %8 = vector.load %arg4[%c0_6, %c0_7] : memref<32x32xf32, #tpu.memory_space<vmem>>, vector<32x32xf32>
    %cst_8 = arith.constant dense<0.000000e+00> : vector<32x128xf32>
    %9 = tpu.matmul %8, %7, %cst_8 {dimension_numbers = #tpu.dot_dimension_numbers<[1], [0], [0], [1], [0, 0, 1, 1], [], []>} : vector<32x32xf32>, vector<32x128xf32>, vector<32x128xf32> -> vector<32x128xf32>
    %c0_9 = arith.constant 0 : index
    %c0_10 = arith.constant 0 : index
    %10 = vector.load %arg5[%c0_9, %c0_10] : memref<32x1xf32, #tpu.memory_space<vmem>>, vector<32x1xf32>
    %11 = vector.broadcast %10 : vector<32x1xf32> to vector<32x128xf32>
    %12 = arith.addf %9, %11 : vector<32x128xf32>
    %cst_11 = arith.constant 0.000000e+00 : f32
    %13 = vector.broadcast %cst_11 : f32 to vector<32x128xf32>
    %14 = arith.maximumf %12, %13 : vector<32x128xf32>
    %c0_12 = arith.constant 0 : index
    %c0_13 = arith.constant 0 : index
    %15 = vector.load %arg6[%c0_12, %c0_13] : memref<8x10xf32, #tpu.memory_space<vmem>>, vector<8x10xf32>
    %cst_14 = arith.constant dense<0.000000e+00> : vector<8x128xf32>
    %16 = tpu.matmul %15, %0, %cst_14 {dimension_numbers = #tpu.dot_dimension_numbers<[1], [0], [0], [1], [0, 0, 1, 1], [], []>} : vector<8x10xf32>, vector<10x128xf32>, vector<8x128xf32> -> vector<8x128xf32>
    %c0_15 = arith.constant 0 : index
    %c0_16 = arith.constant 0 : index
    %17 = vector.load %arg7[%c0_15, %c0_16] : memref<8x32xf32, #tpu.memory_space<vmem>>, vector<8x32xf32>
    %cst_17 = arith.constant dense<0.000000e+00> : vector<8x128xf32>
    %18 = tpu.matmul %17, %14, %cst_17 {dimension_numbers = #tpu.dot_dimension_numbers<[1], [0], [0], [1], [0, 0, 1, 1], [], []>} : vector<8x32xf32>, vector<32x128xf32>, vector<8x128xf32> -> vector<8x128xf32>
    %19 = arith.addf %16, %18 : vector<8x128xf32>
    %c0_18 = arith.constant 0 : index
    %c0_19 = arith.constant 0 : index
    %20 = vector.load %arg8[%c0_18, %c0_19] : memref<8x1xf32, #tpu.memory_space<vmem>>, vector<8x1xf32>
    %21 = vector.broadcast %20 : vector<8x1xf32> to vector<8x128xf32>
    %22 = arith.addf %19, %21 : vector<8x128xf32>
    %c0_20 = arith.constant 0 : index
    %c0_21 = arith.constant 0 : index
    %23 = vector.load %arg9[%c0_20, %c0_21] : memref<8x128xf32, #tpu.memory_space<vmem>>, vector<8x128xf32>
    tpu.vector_store %arg9[%c0_20, %c0_21], %22 {strides = array<i32>} : memref<8x128xf32, #tpu.memory_space<vmem>>, vector<8x128xf32>,
    return
  }
  func.func @transform_0(%arg0: i32) -> (i32, i32) {
    %c0_i32 = arith.constant 0 : i32
    %c0_i32_0 = arith.constant 0 : i32
    return %c0_i32, %arg0 : i32, i32
  }
  func.func @transform_1(%arg0: i32) -> (i32, i32) {
    %c0_i32 = arith.constant 0 : i32
    %c0_i32_0 = arith.constant 0 : i32
    %c0_i32_1 = arith.constant 0 : i32
    return %c0_i32, %c0_i32_0 : i32, i32
  }
  func.func @transform_2(%arg0: i32) -> (i32, i32) {
    %c0_i32 = arith.constant 0 : i32
    %c0_i32_0 = arith.constant 0 : i32
    %c0_i32_1 = arith.constant 0 : i32
    return %c0_i32, %c0_i32_0 : i32, i32
  }
  func.func @transform_3(%arg0: i32) -> (i32, i32) {
    %c0_i32 = arith.constant 0 : i32
    %c0_i32_0 = arith.constant 0 : i32
    %c0_i32_1 = arith.constant 0 : i32
    return %c0_i32, %c0_i32_0 : i32, i32
  }
  func.func @transform_4(%arg0: i32) -> (i32, i32) {
    %c0_i32 = arith.constant 0 : i32
    %c0_i32_0 = arith.constant 0 : i32
    %c0_i32_1 = arith.constant 0 : i32
    return %c0_i32, %c0_i32_0 : i32, i32
  }
  func.func @transform_5(%arg0: i32) -> (i32, i32) {
    %c0_i32 = arith.constant 0 : i32
    %c0_i32_0 = arith.constant 0 : i32
    %c0_i32_1 = arith.constant 0 : i32
    return %c0_i32, %c0_i32_0 : i32, i32
  }
  func.func @transform_6(%arg0: i32) -> (i32, i32) {
    %c0_i32 = arith.constant 0 : i32
    %c0_i32_0 = arith.constant 0 : i32
    %c0_i32_1 = arith.constant 0 : i32
    return %c0_i32, %c0_i32_0 : i32, i32
  }
  func.func @transform_7(%arg0: i32) -> (i32, i32) {
    %c0_i32 = arith.constant 0 : i32
    %c0_i32_0 = arith.constant 0 : i32
    %c0_i32_1 = arith.constant 0 : i32
    return %c0_i32, %c0_i32_0 : i32, i32
  }
  func.func @transform_8(%arg0: i32) -> (i32, i32) {
    %c0_i32 = arith.constant 0 : i32
    %c0_i32_0 = arith.constant 0 : i32
    return %c0_i32, %arg0 : i32, i32
  }
}

</mosaic_0001>

<bundles_post_ra>
// kernel: tpu_custom_call.1
= control target key start
LH: loop header
LB: loop body
LE: loop exit
PB: predicated region body
PF: predicated region fallthrough
CT: control target
= control target key end

     0   :  { %13 = vsyncpa [#allocation4], 0  ;;  %s1266_s0 = inlined_call_operand.vmem [shape: f32[10,256], index: 0, kind: input, shape index: {}]   ;;  %s1267_s1 = inlined_call_operand.vmem [shape: f32[32,10], index: 1, kind: input, shape index: {}]   ;;  %s1268_s2 = inlined_call_operand.vmem [shape: f32[32,1], index: 2, kind: input, shape index: {}]   ;;  %s1269_s3 = inlined_call_operand.vmem [shape: f32[32,32], index: 3, kind: input, shape index: {}]   ;;  %s1270_s4 = inlined_call_operand.vmem [shape: f32[32,1], index: 4, kind: input, shape index: {}]   ;;  %s1271_s5 = inlined_call_operand.vmem [shape: f32[8,10], index: 5, kind: input, shape index: {}]   ;;  %s1272_s6 = inlined_call_operand.vmem [shape: f32[8,32], index: 6, kind: input, shape index: {}]   ;;  %s1273_s7 = inlined_call_operand.vmem [shape: f32[8,1], index: 7, kind: input, shape index: {}]   ;;  %s1274_s8 = inlined_call_operand.hbm [shape: f32[8,256], index: 8, kind: output, shape index: {}]  }
   0x1   :  { %15 = vsyncpa [#allocation4 + $0x1], 0  ;;  %s1087_s27 = smov 0   ;;  %s1089_s28 = smov 0  }
   0x2   :  { %s1091_s29 = smov 0   ;;  %s1093_s30 = smov 0  }
   0x3 LB: > { %s843_s9 = sadd.s32 4294967295, %s1036_s30   ;;  %s844_s10 = sadd.s32 4294967294, %s1036_s30   ;;  %s1036_s30 = sphi %s1093_s30, %s1282_s30   ;;  %s1032_s29 = sphi %s1091_s29, %s1281_s29   ;;  %s1028_s28 = sphi %s1089_s28, %s1280_s28   ;;  %s1024_s27 = sphi %s1087_s27, %s1279_s27  }
   0x4   : > { %s1110_s11 = sadd.s32 1, %s1036_s30   ;;  %s28_s12 = sadd.s32 1, %s1032_s29 }
   0x5   : > { %s25_s13 = ssub.s32 %s1036_s30, %s1110_s11  ;;  %p35_p0 = scmp.ne.s32.totalorder %s1032_s29, %s1028_s28 }
   0x6   : > { %p26_p1 = scmp.eq.s32.totalorder %s25_s13, 0  ;;  %p36_p2 = scmp.eq.s32.totalorder %s1036_s30, 0 }
   0x7   : > { %p212_p3 = scmp.eq.s32.totalorder %s843_s9, 1  ;;  %p217_p4 = scmp.ne.s32.totalorder %s1028_s28, %s1024_s27 }
   0x8   : > { %s1123_s14 = scalar_select %p26_p1, %s1032_s29, %s28_s12  }
   0x9   : > { %p37_p5 = por %p36_p2, %p35_p0  ;;  %p1125_p6 = por %p212_p3, %p35_p0 }
   0xa   : > { %p218_p7 = scmp.eq.s32.totalorder %s844_s10, 1  ;;  %p1275_p9 = scmp.ge.s32.totalorder %s1036_s30, 2 }
   0xc   : > { %p1129_p8 = por %p218_p7, %p217_p4  ;;  %255 = sbr.rel (%p1275_p9) target bundleno = 22 (0x16), region = 44 }
  0x11   : > { %258 = sbr.rel (!%p37_p5) target bundleno = 22 (0x16), region = 48  ;;  %s260_s17 = sand.u32 (%p37_p5), 1, %s1032_s29  }
  0x12   : > { %s848_s18 = sshll.u32 (%p37_p5), %s1036_s30, 3  ;;  %s847_s19 = sshll.u32 (%p37_p5), %s260_s17, 4 }
  0x13   : > { %s264_s22 = scalar_lea.vmem (%p37_p5), %s1266_s0, %s848_s18  ;;  %s262_s23 = scalar_lea.vmem (%p37_p5), [#allocation2], %s847_s19 }
  0x14   : > { %v295_v0 = vld [vmem:[%s264_s22] sm:$0xff] (%p37_p5)  ;;  %v297_v1 = vld [vmem:[%s264_s22 + $0x10] sm:$0xff] (%p37_p5) }
  0x15   : > { %296 = vst [vmem:[%s262_s23] sm:$0xff] (%p37_p5), %v295_v0  ;;  %298 = vst [vmem:[%s262_s23 + $0x8] sm:$0xff] (%p37_p5), %v297_v1 }
  0x16 PF: > { %p849_p10 = scmp.ge.s32.totalorder %s1036_s30, 1  ;;  %p303_p11 = scmp.lt.s32.totalorder %s1036_s30, 3 }
  0x18   : > { %p304_p12 = pnand %p849_p10, %p303_p11 }
  0x19   : > { %s1144_s24 = sand.u32 (!%p304_p12), 1, %s1028_s28   ;;  %s865_s17 = sshll.u32 (!%p304_p12), %s843_s9, 7 }
  0x1a   : > { %307 = sbr.rel (%p304_p12) target bundleno = 669 (0x29d), region = 86  ;;  %s850_s10 = sshll.u32 (!%p304_p12), %s1144_s24, 4 }
  0x1b   : > { %s312_s19 = scalar_lea.vmem (!%p304_p12), [#allocation2], %s850_s10  ;;  %s851_s13 = sshll.u32 (!%p304_p12), %s1144_s24, 3 }
  0x1c   : > { %s342_s18 = scalar_lea.vmem (!%p304_p12), [#allocation3], %s851_s13  ;;  %s777_s22 = scalar_lea.hbm (!%p304_p12), %s1274_s8, %s865_s17 }
  0x1d   : > { %s766_s23 = scalar_lea.sflag (!%p304_p12), [#allocation4], %s1144_s24  ;;  %s1041_s26 = smov (!%p304_p12), [#allocation3]  }
  0x1e   : > { %s980_s9 = sshll.u32 (!%p304_p12), %s1041_s26, 4  ;;  %s981_s9 = int_to_ptr.vmem [resolvable:$false] %s980_s9 }
  0x1f   : > { %v345_v2 = vld [vmem:[%s1267_s1] sm:$0xff]  ;;  %vm373_vm0 = vcmask 80896   ;;  %vm386_vm1 = vcmask 1041408   ;;  %v352_v3 = vld [vmem:[%s1268_s2 + $0x18] sm:$0xff]  ;;  %v1038_v4 = vmov 0   ;;  %v350_v5 = vld [vmem:[%s1268_s2 + $0x8] sm:$0xff] }
  0x20   : > { %894 = vmatprep.mubr.msk.f32.mxu0 %vm373_vm0, %v345_v2  ;;  %974 = vset.pattern.permute.xlu0 %v1038_v4  ;;  %v1157_v6 = vld [vmem:[%s312_s19 + $0x8] sm:$0x3]  ;;  %v1159_v7 = vld [vmem:[%s312_s19] sm:$0xff]  ;;  %vm507_vm2 = vcmask 261120   ;;  %v1039_v38 = vmov 0.0   ;;  %vm1040_vm3 = vmmov 0  }
  0x21   : > { %975 = vset.pattern.permute.xlu1 %v1038_v4  ;;  %370 = vperm.xlu0 %974, %v352_v3   ;;  %v351_v8 = vld [vmem:[%s1268_s2 + $0x10] sm:$0xff]  ;;  %v346_v9 = vld [vmem:[%s1267_s1 + $0x8] sm:$0xff]  ;;  %v349_v10 = vld [vmem:[%s1268_s2] sm:$0xff]  ;;  %s779_s19 = sshll.u32 %s342_s18, 4  ;;  %s982_s10 = scalar_lea.vmem %s981_s9, 256  ;;  %s780_s19 = int_to_ptr.vmem [resolvable:$true] %s779_s19 }
  0x22   : > { %360 = vperm.xlu1 %975, %v350_v5   ;;  %890 = vmatprep.subr.msk.mxu0 %vm386_vm1, %v1157_v6  ;;  %v347_v11 = vld [vmem:[%s1267_s1 + $0x10] sm:$0xff]  ;;  %v486_v12 = vld [vmem:[%s1270_s4 + $0x18] sm:$0xff]  ;;  %v484_v15 = vld [vmem:[%s1270_s4 + $0x8] sm:$0xff]  ;;  %s976_s25 = scalar_lea.vmem %s780_s19, 128  ;;  %p983_p2 = scmp.lt.s32.totalorder %s780_s19, %s981_s9 }
  0x23   : > { %891 = vmatpush3.msk.msra.mxu0 %vm386_vm1, %v1157_v6  ;;  %v348_v13 = vld [vmem:[%s1267_s1 + $0x18] sm:$0xff]  ;;  %v485_v14 = vld [vmem:[%s1270_s4 + $0x10] sm:$0xff]  ;;  %v483_v16 = vld [vmem:[%s1270_s4] sm:$0xff]  ;;  %p977_p13 = scmp.ne.s32.totalorder %s780_s19, %s976_s25  ;;  %p984_p3 = scmp.lt.s32.totalorder %s982_s10, %s976_s25 }
  0x24   : > { %892 = vmatprep.subr.mxu0 %v1159_v7  ;;  %v757_v17 = vld [vmem:[%s1273_s7] sm:$0xff]  ;;  %v480_v35 = vld [vmem:[%s1269_s3 + $0x8] sm:$0xff]  ;;  %v481_v36 = vld [vmem:[%s1269_s3 + $0x10] sm:$0xff] }
  0x25   : > { %893 = vmatpush3.msra.mxu0 %v1159_v7  ;;  %365 = vperm.xlu0 %974, %v351_v8   ;;  %v479_v18 = vld [vmem:[%s1269_s3] sm:$0xff]  ;;  %v482_v37 = vld [vmem:[%s1269_s3 + $0x18] sm:$0xff]  ;;  %p978_p0 = pnand %p977_p13, %p1125_p6  ;;  %p985_p4 = por %p984_p3, %p983_p2 }
  0x26   : > { %895 = vmatmul.mubr.msk.f32.vlgmr.msra.gmra.mxu0 %vm373_vm0, %v346_v9  ;;  %355 = vperm.xlu1 %975, %v349_v10   ;;  %v610_v55 = vld [vmem:[%s1272_s6] sm:$0xff] }
  0x27   : > { %897 = vmatprep.mubr.msk.f32.mxu0 %vm373_vm0, %v347_v11  ;;  %908 = vmatprep.mubr.msk.f32.mxu1 %vm507_vm2, %v479_v18  ;;  %v609_v56 = vld [vmem:[%s1271_s5] sm:$0xff]  ;;  %p979_p1 = pneg %p978_p0 }
  0x28   : > { %914 = vmatprep.subr.mxu0 %v1039_v38 }
  0x29   : > { %504 = vperm.xlu0 %974, %v486_v12   ;;  %p986_p5 = pnand %p985_p4, %p979_p1 }
  0x2a   : > { %898 = vmatmul.mubr.msk.f32.gmra.mxu0 %vm373_vm0, %v348_v13  ;;  %499 = vperm.xlu1 %975, %v485_v14  }
  0x2b   : > { %922 = vmatprep.mubr.msk.f32.mxu0 %vm1040_vm3, %v1039_v38 }
  0x2d   : > { %494 = vperm.xlu0 %974, %v484_v15  }
  0x2e   : > { %489 = vperm.xlu1 %975, %v483_v16  }
  0x31   : > { %760 = vperm.xlu0 %974, %v757_v17  }
  0x9c   : > { %v371_v19 = vpop.permute.xlu0 %370 }
  0x9d   : > { %v361_v21 = vpop.permute.xlu1 %360 }
  0xa0   : > { %v366_v25 = vpop.permute.xlu0 %365 }
  0xa1   : > { %v356_v30 = vpop.permute.xlu1 %355 }
  0xa4   : > { %v505_v39 = vpop.permute.xlu0 %504 }
  0xa5   : > { %v500_v41 = vpop.permute.xlu1 %499 }
  0xa8   : > { %v495_v45 = vpop.permute.xlu0 %494 }
  0xa9   : > { %v490_v50 = vpop.permute.xlu1 %489 }
  0xac   : > { %v761_v61 = vpop.permute.xlu0 %760 }
  0xe6   : > { %v896_v20 = vpop.f32.mrf.mxu0 }
  0xe7   : > { %v462_v27 = vadd.f32 %v896_v20, %v361_v21 }
  0xe8   : > { %v456_v22 = vpop.f32.mrf.mxu0 }
  0xe9   : > { %v457_v31 = vadd.f32 %v456_v22, %v356_v30  ;;  %v476_v33 = vmax.f32 %v462_v27, 0.0 }
  0xea   : > { %v899_v23 = vpop.f32.mrf.mxu0 }
  0xeb   : > { %v472_v24 = vadd.f32 %v899_v23, %v371_v19  ;;  %v475_v34 = vmax.f32 %v457_v31, 0.0 }
  0xec   : > { %v466_v26 = vpop.f32.mrf.mxu0 }
  0xed   : > { %v478_v28 = vmax.f32 %v472_v24, 0.0  ;;  %v467_v29 = vadd.f32 %v466_v26, %v366_v25 }
  0xef   : > { %v477_v32 = vmax.f32 %v467_v29, 0.0  ;;  %900 = vmatprep.subr.mxu1 %v478_v28 }
  0xf0   : > { %901 = vmatpush3.msra.mxu1 %v478_v28 }
  0xf1   : > { %902 = vmatprep.subr.mxu1 %v477_v32 }
  0xf2   : > { %903 = vmatpush3.msra.mxu1 %v477_v32 }
  0xf3   : > { %904 = vmatprep.subr.mxu1 %v476_v33 }
  0xf4   : > { %905 = vmatpush3.msra.mxu1 %v476_v33 }
  0xf5   : > { %906 = vmatprep.subr.mxu1 %v475_v34 }
  0xf6   : > { %907 = vmatpush3.msra.mxu1 %v475_v34 }
  0xf7   : > { %909 = vmatmul.mubr.msk.f32.vlgmr.msra.gmra.mxu1 %vm507_vm2, %v480_v35 }
  0xf8   : > { %911 = vmatprep.mubr.msk.f32.mxu1 %vm507_vm2, %v481_v36 }
  0xfb   : > { %912 = vmatmul.mubr.msk.f32.gmra.mxu1 %vm507_vm2, %v482_v37 }
 0x1b7   : > { %v910_v40 = vpop.f32.mrf.mxu1 }
 0x1b8   : > { %v592_v47 = vadd.f32 %v910_v40, %v495_v45 }
 0x1b9   : > { %v586_v42 = vpop.f32.mrf.mxu1 }
 0x1ba   : > { %v587_v51 = vadd.f32 %v586_v42, %v490_v50  ;;  %v606_v53 = vmax.f32 %v592_v47, 0.0 }
 0x1bb   : > { %v913_v43 = vpop.f32.mrf.mxu1 }
 0x1bc   : > { %v602_v44 = vadd.f32 %v913_v43, %v505_v39  ;;  %v605_v54 = vmax.f32 %v587_v51, 0.0 }
 0x1bd   : > { %v596_v46 = vpop.f32.mrf.mxu1 }
 0x1be   : > { %v608_v48 = vmax.f32 %v602_v44, 0.0  ;;  %v597_v49 = vadd.f32 %v596_v46, %v500_v41 }
 0x1c0   : > { %v607_v52 = vmax.f32 %v597_v49, 0.0  ;;  %915 = vmatpush3.msra.mxu0 %v608_v48 }
 0x1c1   : > { %916 = vmatprep.subr.mxu0 %v1039_v38 }
 0x1c2   : > { %917 = vmatpush3.msra.mxu0 %v607_v52 }
 0x1c3   : > { %918 = vmatprep.subr.mxu0 %v1039_v38 }
 0x1c4   : > { %919 = vmatpush3.msra.mxu0 %v606_v53 }
 0x1c5   : > { %920 = vmatprep.subr.mxu0 %v1039_v38 }
 0x1c6   : > { %921 = vmatpush3.msra.mxu0 %v605_v54 }
 0x1c7   : > { %923 = vmatmul.mubr.msk.f32.vlgmr.msra.gmra.mxu0 %vm507_vm2, %v610_v55  ;;  %925 = vmatprep.subr.mxu0 %v1039_v38 }
 0x1c8   : > { %926 = vmatpush3.msk.msra.mxu0 %vm386_vm1, %v1157_v6  ;;  %929 = vmatprep.mubr.msk.f32.mxu0 %vm1040_vm3, %v1039_v38 }
 0x1c9   : > { %927 = vmatprep.subr.mxu0 %v1039_v38 }
 0x1ca   : > { %928 = vmatpush3.msra.mxu0 %v1159_v7 }
 0x1cb   : > { %930 = vmatmul.mubr.msk.f32.vlgmr.msra.gmra.mxu0 %vm373_vm0, %v609_v56 }
 0x287   : > { %v680_v57 = vpop.f32.mrf.mxu0 }
 0x289   : > { %v924_v58 = vpop.f32.mrf.mxu0 }
 0x28b   : > { %v753_v59 = vpop.f32.mrf.mxu0 }
 0x28c   : > { %v754_v60 = vadd.f32 %v753_v59, %v680_v57 }
 0x28d   : > { %v931_v62 = vpop.f32.mrf.mxu0 }
 0x28e   : > { %v763_v63 = vadd.f32 %v761_v61, %v754_v60 }
 0x290   : > { %764 = vst [vmem:[%s342_s18] sm:$0xff] %v763_v63 }
 0x291   : > { %989 = shalt.err (!%p986_p5)
}
 0x292   : > { %s990_s12 = scalar_lea.hbm %s777_s22, 128  ;;  %s994_s17 = scalar_lea.hbm %s1274_s8, 256 }
 0x293   : > { %p991_p7 = scmp.ne.s32.totalorder %s777_s22, %s990_s12  ;;  %p995_p12 = scmp.lt.s32.totalorder %s777_s22, %s1274_s8 }
 0x294   : > { %p996_p13 = scmp.lt.s32.totalorder %s994_s17, %s990_s12 }
 0x295   : > { %p992_p10 = pnand %p991_p7, %p1125_p6 }
 0x296   : > { %p997_p0 = por %p996_p13, %p995_p12 }
 0x297   : > { %p993_p11 = pneg %p992_p10 }
 0x299   : > { %p998_p9 = pnand %p997_p0, %p993_p11 }
 0x29b   : > { %1001 = shalt.err (!%p998_p9)
}
 0x29c   : > { %932 = dma.vmem_to_hbm [thread:$0]  (%p1125_p6), %s780_s19, 128, %s777_s22, %s766_s23  }
 0x29d PF: > { %s791_s21 = sand.u32 1, %s1024_s27   ;;  %p1278_p1 = scmp.ge.s32.totalorder %s1036_s30, 2 }
 0x29e   : > { %s792_s25 = scalar_lea.sflag [#allocation4], %s791_s21 }
 0x29f   : > { %p935_p2 = pnand %p1278_p1, %p1129_p8 }
 0x2a1   : > { %p936_p3 = pneg %p935_p2 }
 0x2a3   : > { %1019 = dma.done.wait (%p936_p3), %s792_s25, 128  }
 0x2a4   : > { %1021 = vsyncadd (%p936_p3), %s792_s25, 4294967168  ;;  %p18_p9 = scmp.ge.s32.totalorder %s1110_s11, 4   ;;  %s1279_s27 = smov %s1028_s28 }
 0x2a5   : > { %s1280_s28 = smov %s1032_s29  ;;  %s1281_s29 = smov %s1123_s14 }
 0x2a6   : > { %s1282_s30 = smov %s1110_s11  ;;  %20 = sbr.rel (!%p18_p9) target bundleno = 3 (0x3), region = 130 }
 0x2ab   :  { %797 = vsyncpa [#allocation4], 1 }
 0x2ac   :  { %799 = vsyncpa [#allocation4 + $0x1], 1 }

</bundles_post_ra>
